<compile_context>
chip_gen: v6e
topology: v6e:2x2x1
jax: 0.10.0
libtpu: 0.0.40
codegen_flags: <defaults>
</compile_context>

<pallas_src>
import math

import jax
import jax.numpy as jnp
from jax.experimental import pallas as pl
from jax.experimental.pallas import tpu as pltpu


_SQRT_2_OVER_PI = math.sqrt(2.0 / math.pi)


def _gelu_tanh(h):
    # TODO(synk): PyTorch nn.GELU() default is the exact erf form; the tanh
    # approximation (max abs deviation ~3e-3) is used because erf has no
    # guaranteed Mosaic lowering.  The reference check uses the same formula.
    return 0.5 * h * (1.0 + jnp.tanh(_SQRT_2_OVER_PI * (h + 0.044715 * h * h * h)))


def _temporal_emb_kernel(x_ref, w1_ref, b1_ref, w2_ref, b2_ref, o_ref):
    # x_ref: (TM, 1), w1/b1: (1, H), w2: (H, C), b2: (1, C), o_ref: (TM, C)
    h = x_ref[...] * w1_ref[...] + b1_ref[...]            # VPU broadcast (TM, H)
    g = _gelu_tanh(h)                                     # EUP tanh
    out = jnp.dot(g, w2_ref[...],
                  preferred_element_type=jnp.float32)     # MXU (TM, C)
    o_ref[...] = (out + b2_ref[...]).astype(o_ref.dtype)


def _temporal_emb_dropout_kernel(x_ref, w1_ref, b1_ref, w2_ref, b2_ref,
                                 m_ref, o_ref):
    # Same as above, plus a pre-scaled dropout mask m_ref: (TM, C).
    h = x_ref[...] * w1_ref[...] + b1_ref[...]
    g = _gelu_tanh(h)
    out = jnp.dot(g, w2_ref[...],
                  preferred_element_type=jnp.float32) + b2_ref[...]
    o_ref[...] = (out * m_ref[...]).astype(o_ref.dtype)


def _round_up(n, m):
    return ((n + m - 1) // m) * m


def _choose_tm(N, C, H, block_rows, training):
    """Largest multiple-of-8 row tile that fits a conservative VMEM budget."""
    budget = 10 * 1024 * 1024                        # safe under v5e's 16 MiB scoped default
    weights = 4 * (2 * H + H * C + C)                # resident across the grid
    per_row = 2 * 4 * (C + 1)                        # double-buffered out + x (f32)
    per_row += 2 * 4 * H + 4 * C                     # h/g intermediates + store staging (rough)
    if training:
        per_row += 2 * 4 * C                         # double-buffered f32 mask
    tm = max((budget - weights) // per_row, 8)
    tm = min(int(block_rows), tm, _round_up(N, 8))
    return max(8, (tm // 8) * 8)


def learnt_temporal_embedding(x, w1, b1, w2, b2, *, p_drop=0.2,
                              training=False, rng=None, block_rows=1024):
    """Pallas equivalent of LearntTemporalEmbedding.forward(x).

    x  : (B, T) time values (the module's input before .unsqueeze(-1));
         a trailing singleton dim is also accepted.
    w1 : (H,)   == Linear(1, H).weight.squeeze(-1);     b1 : (H,)
    w2 : (H, C) == Linear(H, C).weight.T;               b2 : (C,)
    Returns (B, T, C) float32.
    """
    if x.ndim == 3 and x.shape[-1] == 1:
        x = x[..., 0]
    B, T = x.shape
    H = w1.shape[0]
    C = b2.shape[0]

    N = B * T
    tm = _choose_tm(N, C, H, block_rows, training and p_drop > 0.0)
    n_blocks = pl.cdiv(N, tm)                       # partial edge block is masked

    x_rows = x.reshape(N, 1).astype(jnp.float32)    # free row-major view, no padding
    w1r = w1.reshape(1, H).astype(jnp.float32)
    b1r = b1.reshape(1, H).astype(jnp.float32)
    w2r = w2.astype(jnp.float32)
    b2r = b2.reshape(1, C).astype(jnp.float32)

    row_spec = pl.BlockSpec((tm, 1), lambda i: (i, 0))
    out_spec = pl.BlockSpec((tm, C), lambda i: (i, 0))
    w1_spec = pl.BlockSpec((1, H), lambda i: (0, 0))    # resident across grid
    b1_spec = pl.BlockSpec((1, H), lambda i: (0, 0))
    w2_spec = pl.BlockSpec((H, C), lambda i: (0, 0))
    b2_spec = pl.BlockSpec((1, C), lambda i: (0, 0))

    args = [x_rows, w1r, b1r, w2r, b2r]
    in_specs = [row_spec, w1_spec, b1_spec, w2_spec, b2_spec]
    kernel = _temporal_emb_kernel

    if training and p_drop > 0.0:
        # Inverted dropout; mask built with jax.random in the wrapper (portable,
        # avoids in-kernel PRNG).  PyTorch RNG stream is not reproduced bitwise.
        if rng is None:
            rng = jax.random.PRNGKey(0)
        keep = jax.random.bernoulli(rng, 1.0 - float(p_drop), (N, C))
        mask = keep.astype(jnp.float32) * (1.0 / (1.0 - float(p_drop)))
        args.append(mask)
        in_specs.append(pl.BlockSpec((tm, C), lambda i: (i, 0)))
        kernel = _temporal_emb_dropout_kernel

    out = pl.pallas_call(
        kernel,
        out_shape=jax.ShapeDtypeStruct((N, C), jnp.float32),
        grid=(n_blocks,),
        in_specs=in_specs,
        out_specs=out_spec,
        compiler_params=pltpu.CompilerParams(
            dimension_semantics=("parallel",)),     # shards rows across v7x's two TCs
    )(*args)

    return out.reshape(B, T, C)                     # free reshape (no slice copy)


def _reference(x, w1, b1, w2, b2):
    """Pure-JAX reference (same tanh-GELU formula as the kernel)."""
    h = x[..., None] * w1 + b1                      # (B, T, H)
    g = 0.5 * h * (1.0 + jnp.tanh(_SQRT_2_OVER_PI * (h + 0.044715 * h ** 3)))
    return g @ w2 + b2                              # (B, T, C)


if __name__ == "__main__":
    key = jax.random.PRNGKey(0)
    kx, k1, k2, k3, k4, kd = jax.random.split(key, 6)

    B, T, C = 2, 8, 128                             # lane-dense output (C = n_embd)
    H = C // 2

    x = jax.random.normal(kx, (B, T), dtype=jnp.float32)
    # Weights drawn like PyTorch Linear defaults: U(-1/sqrt(fan_in), 1/sqrt(fan_in)).
    w1 = jax.random.uniform(k1, (H,), minval=-1.0, maxval=1.0)          # fan_in=1
    b1 = jax.random.uniform(k2, (H,), minval=-1.0, maxval=1.0)
    lim2 = 1.0 / math.sqrt(H)
    w2 = jax.random.uniform(k3, (H, C), minval=-lim2, maxval=lim2)      # Linear(H,C).weight.T
    b2 = jax.random.uniform(k4, (C,), minval=-lim2, maxval=lim2)

    # Eval mode (dropout = identity) — deterministic, checked against reference.
    out = learnt_temporal_embedding(x, w1, b1, w2, b2, p_drop=0.2, training=False)
    out = jax.block_until_ready(out)

    ref = _reference(x, w1, b1, w2, b2)
    assert out.shape == (B, T, C), out.shape
    assert jnp.allclose(out, ref, atol=1e-4, rtol=1e-4), \
        float(jnp.max(jnp.abs(out - ref)))

    # Exercise the training (dropout) path once to make sure it runs.
    out_train = jax.block_until_ready(
        learnt_temporal_embedding(x, w1, b1, w2, b2, p_drop=0.2,
                                  training=True, rng=kd))
    assert out_train.shape == (B, T, C)

    print("KERNEL_OK")
</pallas_src>

<mosaic_0001>
module attributes {stable_mosaic.version = 11 : i64} {
  func.func @_temporal_emb_kernel(%arg0: i32, %arg1: memref<16x1xf32, #tpu.memory_space<vmem>>, %arg2: memref<1x64xf32, #tpu.memory_space<vmem>>, %arg3: memref<1x64xf32, #tpu.memory_space<vmem>>, %arg4: memref<64x128xf32, #tpu.memory_space<vmem>>, %arg5: memref<1x128xf32, #tpu.memory_space<vmem>>, %arg6: memref<16x128xf32, #tpu.memory_space<vmem>>) attributes {dimension_semantics = [#tpu.dimension_semantics<parallel>], iteration_bounds = array<i64: 1>, scalar_prefetch = 0 : i64, scratch_operands = 0 : i64, tpu.core_type = #tpu.core_type<tc>, window_params = [{transform_indices = @transform_0, window_bounds = array<i64: 16, 1>}, {pipeline_mode = #tpu.pipeline_mode<synchronous>, transform_indices = @transform_1, window_bounds = array<i64: 1, 64>}, {pipeline_mode = #tpu.pipeline_mode<synchronous>, transform_indices = @transform_2, window_bounds = array<i64: 1, 64>}, {pipeline_mode = #tpu.pipeline_mode<synchronous>, transform_indices = @transform_3, window_bounds = array<i64: 64, 128>}, {pipeline_mode = #tpu.pipeline_mode<synchronous>, transform_indices = @transform_4, window_bounds = array<i64: 1, 128>}, {transform_indices = @transform_5, window_bounds = array<i64: 16, 128>}]} {
    %c0 = arith.constant 0 : index
    %c0_0 = arith.constant 0 : index
    %0 = vector.load %arg1[%c0, %c0_0] : memref<16x1xf32, #tpu.memory_space<vmem>>, vector<16x1xf32>
    %c0_1 = arith.constant 0 : index
    %c0_2 = arith.constant 0 : index
    %1 = vector.load %arg2[%c0_1, %c0_2] : memref<1x64xf32, #tpu.memory_space<vmem>>, vector<1x64xf32>
    %2 = vector.broadcast %0 : vector<16x1xf32> to vector<16x64xf32>
    %3 = vector.broadcast %1 : vector<1x64xf32> to vector<16x64xf32>
    %4 = arith.mulf %2, %3 : vector<16x64xf32>
    %c0_3 = arith.constant 0 : index
    %c0_4 = arith.constant 0 : index
    %5 = vector.load %arg3[%c0_3, %c0_4] : memref<1x64xf32, #tpu.memory_space<vmem>>, vector<1x64xf32>
    %6 = vector.broadcast %5 : vector<1x64xf32> to vector<16x64xf32>
    %7 = arith.addf %4, %6 : vector<16x64xf32>
    %cst = arith.constant 5.000000e-01 : f32
    %8 = vector.broadcast %cst : f32 to vector<16x64xf32>
    %9 = arith.mulf %8, %7 : vector<16x64xf32>
    %cst_5 = arith.constant 4.471500e-02 : f32
    %10 = vector.broadcast %cst_5 : f32 to vector<16x64xf32>
    %11 = arith.mulf %10, %7 : vector<16x64xf32>
    %12 = arith.mulf %11, %7 : vector<16x64xf32>
    %13 = arith.mulf %12, %7 : vector<16x64xf32>
    %14 = arith.addf %7, %13 : vector<16x64xf32>
    %cst_6 = arith.constant 0.797884583 : f32
    %15 = vector.broadcast %cst_6 : f32 to vector<16x64xf32>
    %16 = arith.mulf %15, %14 : vector<16x64xf32>
    %17 = math.tanh %16 : vector<16x64xf32>
    %cst_7 = arith.constant 1.000000e+00 : f32
    %18 = vector.broadcast %cst_7 : f32 to vector<16x64xf32>
    %19 = arith.addf %18, %17 : vector<16x64xf32>
    %20 = arith.mulf %9, %19 : vector<16x64xf32>
    %c0_8 = arith.constant 0 : index
    %c0_9 = arith.constant 0 : index
    %21 = vector.load %arg4[%c0_8, %c0_9] : memref<64x128xf32, #tpu.memory_space<vmem>>, vector<64x128xf32>
    %cst_10 = arith.constant dense<0.000000e+00> : vector<16x128xf32>
    %22 = tpu.matmul %20, %21, %cst_10 {dimension_numbers = #tpu.dot_dimension_numbers<[1], [0], [0], [1], [0, 0, 1, 1], [], []>} : vector<16x64xf32>, vector<64x128xf32>, vector<16x128xf32> -> vector<16x128xf32>
    %c0_11 = arith.constant 0 : index
    %c0_12 = arith.constant 0 : index
    %23 = vector.load %arg5[%c0_11, %c0_12] : memref<1x128xf32, #tpu.memory_space<vmem>>, vector<1x128xf32>
    %24 = vector.broadcast %23 : vector<1x128xf32> to vector<16x128xf32>
    %25 = arith.addf %22, %24 : vector<16x128xf32>
    %c0_13 = arith.constant 0 : index
    %c0_14 = arith.constant 0 : index
    %26 = vector.load %arg6[%c0_13, %c0_14] : memref<16x128xf32, #tpu.memory_space<vmem>>, vector<16x128xf32>
    tpu.vector_store %arg6[%c0_13, %c0_14], %25 {strides = array<i32>} : memref<16x128xf32, #tpu.memory_space<vmem>>, vector<16x128xf32>,
    return
  }
  func.func @transform_0(%arg0: i32) -> (i32, i32) {
    %c0_i32 = arith.constant 0 : i32
    %c0_i32_0 = arith.constant 0 : i32
    return %arg0, %c0_i32 : i32, i32
  }
  func.func @transform_1(%arg0: i32) -> (i32, i32) {
    %c0_i32 = arith.constant 0 : i32
    %c0_i32_0 = arith.constant 0 : i32
    %c0_i32_1 = arith.constant 0 : i32
    return %c0_i32, %c0_i32_0 : i32, i32
  }
  func.func @transform_2(%arg0: i32) -> (i32, i32) {
    %c0_i32 = arith.constant 0 : i32
    %c0_i32_0 = arith.constant 0 : i32
    %c0_i32_1 = arith.constant 0 : i32
    return %c0_i32, %c0_i32_0 : i32, i32
  }
  func.func @transform_3(%arg0: i32) -> (i32, i32) {
    %c0_i32 = arith.constant 0 : i32
    %c0_i32_0 = arith.constant 0 : i32
    %c0_i32_1 = arith.constant 0 : i32
    return %c0_i32, %c0_i32_0 : i32, i32
  }
  func.func @transform_4(%arg0: i32) -> (i32, i32) {
    %c0_i32 = arith.constant 0 : i32
    %c0_i32_0 = arith.constant 0 : i32
    %c0_i32_1 = arith.constant 0 : i32
    return %c0_i32, %c0_i32_0 : i32, i32
  }
  func.func @transform_5(%arg0: i32) -> (i32, i32) {
    %c0_i32 = arith.constant 0 : i32
    %c0_i32_0 = arith.constant 0 : i32
    return %arg0, %c0_i32 : i32, i32
  }
}

</mosaic_0001>

<bundles_post_ra>
// kernel: tpu_custom_call.1
= control target key start
LH: loop header
LB: loop body
LE: loop exit
PB: predicated region body
PF: predicated region fallthrough
CT: control target
= control target key end

     0   :  { %10 = vsyncpa [#allocation3], 0  ;;  %s349_s0 = inlined_call_operand.vmem [shape: f32[16,1], index: 0, kind: input, shape index: {}]   ;;  %s350_s1 = inlined_call_operand.vmem [shape: f32[1,64], index: 1, kind: input, shape index: {}]   ;;  %s351_s2 = inlined_call_operand.vmem [shape: f32[1,64], index: 2, kind: input, shape index: {}]   ;;  %s352_s3 = inlined_call_operand.hbm [shape: f32[64,128], index: 3, kind: input, shape index: {}]   ;;  %s353_s4 = inlined_call_operand.vmem [shape: f32[1,128], index: 4, kind: input, shape index: {}]   ;;  %s354_s5 = inlined_call_operand.hbm [shape: f32[16,128], index: 5, kind: output, shape index: {}]  }
   0x1   :  { %11 = vsyncpa [#allocation4], 0  ;;  %s287_s18 = smov [#allocation2]  }
   0x2   :  { %s23_s19 = sshll.u32 %s287_s18, 4  ;;  %s24_s19 = int_to_ptr.vmem [resolvable:$true] %s23_s19 }
   0x3   :  { %s251_s20 = scalar_lea.vmem %s24_s19, 1024  ;;  %p256_p1 = scmp.lt.s32.totalorder %s24_s19, %s24_s19 }
   0x4   :  { %p252_p0 = scmp.ne.s32.totalorder %s24_s19, %s251_s20  ;;  %p257_p2 = scmp.lt.s32.totalorder %s251_s20, %s251_s20 }
   0x6   :  { %p258_p3 = por %p257_p2, %p256_p1 }
   0x8   :  { %p259_p4 = pnand %p258_p3, %p252_p0 }
   0xa   :  { %262 = shalt.err (!%p259_p4)
}
   0xb   :  { %s288_s21 = smov 128   ;;  %s289_s22 = smov 8  }
   0xc   :  { %29 = dma.hbm_to_vmem [thread:$0]  %s352_s3, 1024, %s24_s19, [#allocation3], %s288_s21, %s288_s21, %s289_s22  }
   0xd   :  { %283 = dma.done.wait [#allocation3], 1024  }
   0xe   :  { %284 = vsyncadd [#allocation3], 4294966272  ;;  %v290_v0 = vmov 0   ;;  %v35_v1 = vld [vmem:[%s349_s0] sm:$0xff]  ;;  %v36_v2 = vld [vmem:[%s349_s0 + $0x8] sm:$0xff]  ;;  %vm98_vm0 = vcmask 523264  }
   0xf   :  { %238 = vset.pattern.permute.xlu0 %v290_v0  ;;  %v90_v3 = vld [vmem:[#allocation2 + $0x38] sm:$0xff]  ;;  %v89_v4 = vld [vmem:[#allocation2 + $0x30] sm:$0xff]  ;;  %v88_v5 = vld [vmem:[#allocation2 + $0x28] sm:$0xff]  ;;  %s291_s6 = smov [#allocation5]  }
  0x10   :  { %40 = vperm.xlu0 %238, %v35_v1   ;;  %214 = vmatprep.subr.mxu0 %v90_v3  ;;  %v87_v6 = vld [vmem:[#allocation2 + $0x20] sm:$0xff]  ;;  %v86_v7 = vld [vmem:[#allocation2 + $0x18] sm:$0xff]  ;;  %v85_v8 = vld [vmem:[#allocation2 + $0x10] sm:$0xff]  ;;  %s187_s7 = sshll.u32 %s291_s6, 4  ;;  %s188_s7 = int_to_ptr.vmem [resolvable:$true] %s187_s7 }
  0x11   :  { %215 = vmatpush3.msra.mxu0 %v90_v3  ;;  %v84_v9 = vld [vmem:[#allocation2 + $0x8] sm:$0xff]  ;;  %v83_v10 = vld [vmem:[#allocation2] sm:$0xff]  ;;  %s263_s8 = scalar_lea.vmem %s188_s7, 256  ;;  %p268_p6 = scmp.lt.s32.totalorder %s188_s7, %s188_s7 }
  0x12   :  { %216 = vmatprep.subr.mxu0 %v89_v4  ;;  %v199_v11 = vld [vmem:[%s350_s1] ss:$0 sm:$0xff]  ;;  %p264_p5 = scmp.ne.s32.totalorder %s188_s7, %s263_s8  ;;  %p269_p7 = scmp.lt.s32.totalorder %s263_s8, %s263_s8 }
  0x13   :  { %217 = vmatpush3.msra.mxu0 %v89_v4  ;;  %v200_v12 = vld [vmem:[%s351_s2] ss:$0 sm:$0xff] }
  0x14   :  { %45 = vperm.xlu0 %238, %v36_v2   ;;  %218 = vmatprep.subr.mxu0 %v88_v5  ;;  %v201_v37 = vld [vmem:[%s353_s4] ss:$0 sm:$0xff]  ;;  %p270_p8 = por %p269_p7, %p268_p6 }
  0x15   :  { %219 = vmatpush3.msra.mxu0 %v88_v5 }
  0x16   :  { %220 = vmatprep.subr.mxu0 %v87_v6  ;;  %p271_p9 = pnand %p270_p8, %p264_p5 }
  0x17   :  { %221 = vmatpush3.msra.mxu0 %v87_v6 }
  0x18   :  { %222 = vmatprep.subr.mxu0 %v86_v7 }
  0x19   :  { %223 = vmatpush3.msra.mxu0 %v86_v7 }
  0x1a   :  { %224 = vmatprep.subr.mxu0 %v85_v8 }
  0x1b   :  { %225 = vmatpush3.msra.mxu0 %v85_v8 }
  0x1c   :  { %226 = vmatprep.subr.mxu0 %v84_v9 }
  0x1d   :  { %227 = vmatpush3.msra.mxu0 %v84_v9 }
  0x1e   :  { %228 = vmatprep.subr.mxu0 %v83_v10 }
  0x1f   :  { %229 = vmatpush3.msra.mxu0 %v83_v10 }
  0x8b   :  { %v41_v13 = vpop.permute.xlu0 %40 }
  0x8c   :  { %v54_v14 = vmul.f32 %v199_v11, %v41_v13 }
  0x8e   :  { %v63_v15 = vadd.f32 %v200_v12, %v54_v14 }
  0x8f   :  { %v46_v16 = vpop.permute.xlu0 %45 }
  0x90   :  { %v55_v17 = vmul.f32 %v199_v11, %v46_v16  ;;  %v67_v18 = vmul.f32 0.044715, %v63_v15  ;;  %v65_v30 = vmul.f32 0.5, %v63_v15 }
  0x92   :  { %v64_v19 = vadd.f32 %v200_v12, %v55_v17  ;;  %v69_v20 = vmul.f32 %v67_v18, %v63_v15 }
  0x94   :  { %v68_v21 = vmul.f32 0.044715, %v64_v19  ;;  %v71_v22 = vmul.f32 %v69_v20, %v63_v15  ;;  %v66_v34 = vmul.f32 0.5, %v64_v19 }
  0x96   :  { %v70_v23 = vmul.f32 %v68_v21, %v64_v19  ;;  %v73_v24 = vadd.f32 %v71_v22, %v63_v15 }
  0x98   :  { %v72_v25 = vmul.f32 %v70_v23, %v64_v19  ;;  %v75_v26 = vmul.f32 0.7978846, %v73_v24 }
  0x9a   :  { %239 = vtanh.f32 %v75_v26  ;;  %v74_v27 = vadd.f32 %v72_v25, %v64_v19 }
  0x9c   :  { %v76_v28 = vmul.f32 0.7978846, %v74_v27 }
  0x9e   :  { %241 = vtanh.f32 %v76_v28 }
  0xa7   :  { %v240_v29 = vpop.eup %239 }
  0xa8   :  { %v79_v31 = vadd.f32 1.0, %v240_v29 }
  0xaa   :  { %v81_v32 = vmul.f32 %v79_v31, %v65_v30 }
  0xab   :  { %v242_v33 = vpop.eup %241 }
  0xac   :  { %230 = vmatprep.mubr.msk.f32.mxu0 %vm98_vm0, %v81_v32  ;;  %v80_v35 = vadd.f32 1.0, %v242_v33 }
  0xae   :  { %v82_v36 = vmul.f32 %v80_v35, %v66_v34 }
  0xb0   :  { %231 = vmatmul.mubr.msk.f32.vlgmr.msra.gmra.mxu0 %vm98_vm0, %v82_v36 }
 0x170   :  { %v232_v38 = vpop.f32.mrf.mxu0 }
 0x171   :  { %v177_v39 = vadd.f32 %v232_v38, %v201_v37 }
 0x172   :  { %v171_v40 = vpop.f32.mrf.mxu0 }
 0x173   :  { %181 = vst [vmem:[#allocation5 + $0x8] sm:$0xff] %v177_v39  ;;  %v172_v41 = vadd.f32 %v201_v37, %v171_v40 }
 0x175   :  { %180 = vst [vmem:[#allocation5] sm:$0xff] %v172_v41 }
 0x176   :  { %274 = shalt.err (!%p271_p9)
}
 0x177   :  { %193 = dma.vmem_to_hbm [thread:$0]  %s188_s7, 256, %s354_s5, [#allocation4], %s288_s21, %s288_s21, %s289_s22  }
 0x178   :  { %285 = dma.done.wait [#allocation4], 256  }
 0x179   :  { %286 = vsyncadd [#allocation4], 4294967040 }
 0x17a   :  { %197 = vsyncpa [#allocation3], 1 }
 0x17b   :  { %198 = vsyncpa [#allocation4], 1 }

</bundles_post_ra>
